<compile_context>
chip_gen: v6e
topology: v6e:2x2x1
jax: 0.10.0
libtpu: 0.0.40
codegen_flags: <defaults>
</compile_context>

<pallas_src>
import math

import jax
import jax.numpy as jnp
from jax.experimental import pallas as pl
from jax.experimental.pallas import tpu as pltpu


def _round_up(x, m):
    return (x + m - 1) // m * m


def _gelu_tanh(x):
    # GELU with tanh approximation, matching torch.nn.functional.gelu(approximate='tanh')
    c = math.sqrt(2.0 / math.pi)
    return 0.5 * x * (1.0 + jnp.tanh(c * (x + 0.044715 * x * x * x)))


def siglip_mlp_kernel(x_ref, w1_ref, b1_ref, w2_ref, b2_ref, o_ref, acc_ref):
    # x_ref:   (TM, H)   tile of token rows
    # w1_ref:  (H, TI)   fc1 weight slice (transposed vs. PyTorch)
    # b1_ref:  (1, TI)   fc1 bias slice (f32)
    # w2_ref:  (TI, H)   fc2 weight slice (transposed vs. PyTorch)
    # b2_ref:  (1, H)    fc2 bias (f32)
    # o_ref:   (TM, H)   output tile (resident across the I grid axis)
    # acc_ref: (TM, H)   f32 accumulator scratch
    j = pl.program_id(1)

    @pl.when(j == 0)
    def _():
        acc_ref[...] = jnp.zeros_like(acc_ref)

    # Cast matmul inputs to the weight dtype (bf16 weights -> bf16 MXU inputs),
    # accumulate in f32 on the MXU.
    x = x_ref[...].astype(w1_ref.dtype)
    h = jnp.dot(x, w1_ref[...], preferred_element_type=jnp.float32) + b1_ref[...]
    h = _gelu_tanh(h)  # activation math stays in f32 (EUP tanh)
    acc_ref[...] += jnp.dot(h.astype(w2_ref.dtype), w2_ref[...],
                            preferred_element_type=jnp.float32)

    @pl.when(j == pl.num_programs(1) - 1)
    def _():
        o_ref[...] = (acc_ref[...] + b2_ref[...]).astype(o_ref.dtype)


def siglip_mlp(hidden_states, w1, b1, w2, b2, *, tile_m=256, tile_i=512):
    """hidden_states: (B, S, H); w1: (H, I); b1: (I,); w2: (I, H); b2: (H,)."""
    B, S, H = hidden_states.shape
    Hw, I = w1.shape
    assert Hw == H and w2.shape == (I, H) and b1.shape == (I,) and b2.shape == (H,)

    x = hidden_states.reshape(B * S, H)
    M = B * S

    # Row tiling: clamp to the (padded) problem size, pad M up to a tile multiple.
    tile_m = min(tile_m, _round_up(M, 8))
    M_pad = _round_up(M, tile_m)
    # Intermediate-dim tiling: keep slices lane-aligned (multiples of 128).
    tile_i = min(tile_i, _round_up(I, 128))
    I_pad = _round_up(I, tile_i)

    if M_pad != M:
        x = jnp.pad(x, ((0, M_pad - M), (0, 0)))
    if I_pad != I:
        w1 = jnp.pad(w1, ((0, 0), (0, I_pad - I)))
        b1 = jnp.pad(b1, ((0, I_pad - I),))
        w2 = jnp.pad(w2, ((0, I_pad - I), (0, 0)))

    # Biases in f32: they are added to the f32 accumulator / f32 activation.
    b1_2d = b1.reshape(1, I_pad).astype(jnp.float32)
    b2_2d = b2.reshape(1, H).astype(jnp.float32)

    grid = (M_pad // tile_m, I_pad // tile_i)

    # VMEM budget: double-buffered input/output/weight tiles + f32 accumulator,
    # with headroom; clamped to a range safe on v5e/v6e/v7x (v7x has 64 MiB/TC).
    x_it = x.dtype.itemsize
    w_it = w1.dtype.itemsize
    o_it = hidden_states.dtype.itemsize
    est = (2 * tile_m * H * x_it                      # x tiles (double buffered)
           + 2 * tile_m * H * o_it                    # out tiles
           + 2 * (H * tile_i + tile_i * H) * w_it     # w1/w2 slices
           + 2 * (tile_i + H) * 4                     # bias slices (f32)
           + tile_m * H * 4)                          # accumulator
    vmem_limit = int(max(16 * 1024 * 1024,
                         min(48 * 1024 * 1024, 2 * est + (4 << 20))))

    cost = pl.CostEstimate(
        flops=4 * M * H * I,
        transcendentals=M * I,
        bytes_accessed=(M * H * x_it + M * H * o_it
                        + (w1.size + w2.size) * w_it + (I_pad + H) * 4),
    )

    out = pl.pallas_call(
        siglip_mlp_kernel,
        out_shape=jax.ShapeDtypeStruct((M_pad, H), hidden_states.dtype),
        grid_spec=pltpu.PrefetchScalarGridSpec(
            num_scalar_prefetch=0,
            grid=grid,
            in_specs=[
                pl.BlockSpec((tile_m, H), lambda i, j: (i, 0)),
                pl.BlockSpec((H, tile_i), lambda i, j: (0, j)),
                pl.BlockSpec((1, tile_i), lambda i, j: (0, j)),
                pl.BlockSpec((tile_i, H), lambda i, j: (j, 0)),
                pl.BlockSpec((1, H), lambda i, j: (0, 0)),
            ],
            out_specs=pl.BlockSpec((tile_m, H), lambda i, j: (i, 0)),
            scratch_shapes=[pltpu.VMEM((tile_m, H), jnp.float32)],
        ),
        compiler_params=pltpu.CompilerParams(
            dimension_semantics=("parallel", "arbitrary"),
            vmem_limit_bytes=vmem_limit,
        ),
        cost_estimate=cost,
    )(x, w1, b1_2d, w2, b2_2d)

    return out[:M].reshape(B, S, H)


def reference_mlp(hidden_states, w1, b1, w2, b2):
    h = hidden_states @ w1 + b1
    h = _gelu_tanh(h)
    return h @ w2 + b2


if __name__ == "__main__":
    # Small config consistent with SigLIPVisionConfig (hidden_size, intermediate_size)
    B, S = 2, 8          # batch, sequence length (num patches)
    H, I = 128, 256      # hidden_size, intermediate_size (TPU-tile friendly)

    key = jax.random.PRNGKey(0)
    k_x, k_w1, k_b1, k_w2, k_b2 = jax.random.split(key, 5)

    x = jax.random.normal(k_x, (B, S, H), dtype=jnp.float32)
    w1 = jax.random.normal(k_w1, (H, I), dtype=jnp.float32) / math.sqrt(H)
    b1 = jax.random.normal(k_b1, (I,), dtype=jnp.float32) * 0.01
    w2 = jax.random.normal(k_w2, (I, H), dtype=jnp.float32) / math.sqrt(I)
    b2 = jax.random.normal(k_b2, (H,), dtype=jnp.float32) * 0.01

    ref = reference_mlp(x, w1, b1, w2, b2)

    # f32 path (tile_i=128 so the I-reduction/accumulator path is exercised).
    out = jax.block_until_ready(siglip_mlp(x, w1, b1, w2, b2, tile_m=256, tile_i=128))
    assert out.shape == (B, S, H)
    assert jnp.allclose(out, ref, atol=1e-4, rtol=1e-4), "f32 mismatch vs reference"

    # bf16-weight path (bf16 MXU inputs, f32 accumulation) — production numerics.
    out_bf16 = jax.block_until_ready(
        siglip_mlp(x, w1.astype(jnp.bfloat16), b1, w2.astype(jnp.bfloat16), b2))
    assert jnp.allclose(out_bf16.astype(jnp.float32), ref, atol=5e-2, rtol=5e-2), \
        "bf16 mismatch vs reference"

    print("KERNEL_OK")
</pallas_src>

<mosaic_0001>
module attributes {stable_mosaic.version = 11 : i64} {
  func.func @siglip_mlp_kernel(%arg0: i32, %arg1: i32, %arg2: memref<16x128xf32, #tpu.memory_space<vmem>>, %arg3: memref<128x128xf32, #tpu.memory_space<vmem>>, %arg4: memref<1x128xf32, #tpu.memory_space<vmem>>, %arg5: memref<128x128xf32, #tpu.memory_space<vmem>>, %arg6: memref<1x128xf32, #tpu.memory_space<vmem>>, %arg7: memref<16x128xf32, #tpu.memory_space<vmem>>, %arg8: memref<16x128xf32, #tpu.memory_space<vmem>>) attributes {dimension_semantics = [#tpu.dimension_semantics<parallel>, #tpu.dimension_semantics<arbitrary>], iteration_bounds = array<i64: 1, 2>, scalar_prefetch = 0 : i64, scratch_operands = 1 : i64, tpu.core_type = #tpu.core_type<tc>, window_params = [{transform_indices = @transform_0, window_bounds = array<i64: 16, 128>}, {transform_indices = @transform_1, window_bounds = array<i64: 128, 128>}, {transform_indices = @transform_2, window_bounds = array<i64: 1, 128>}, {transform_indices = @transform_3, window_bounds = array<i64: 128, 128>}, {pipeline_mode = #tpu.pipeline_mode<synchronous>, transform_indices = @transform_4, window_bounds = array<i64: 1, 128>}, {transform_indices = @transform_5, window_bounds = array<i64: 16, 128>}]} {
    %c0_i32 = arith.constant 0 : i32
    %0 = arith.cmpi eq, %arg1, %c0_i32 : i32
    %1 = arith.extui %0 : i1 to i32
    %c0_i32_0 = arith.constant 0 : i32
    %2 = arith.cmpi ne, %1, %c0_i32_0 : i32
    scf.if %2 {
      %cst_18 = arith.constant 0.000000e+00 : f32
      %30 = vector.broadcast %cst_18 : f32 to vector<16x128xf32>
      %c0_19 = arith.constant 0 : index
      %c0_20 = arith.constant 0 : index
      %31 = vector.load %arg8[%c0_19, %c0_20] : memref<16x128xf32, #tpu.memory_space<vmem>>, vector<16x128xf32>
      tpu.vector_store %arg8[%c0_19, %c0_20], %30 {strides = array<i32>} : memref<16x128xf32, #tpu.memory_space<vmem>>, vector<16x128xf32>,
    } else {
    }
    %c0 = arith.constant 0 : index
    %c0_1 = arith.constant 0 : index
    %3 = vector.load %arg2[%c0, %c0_1] : memref<16x128xf32, #tpu.memory_space<vmem>>, vector<16x128xf32>
    %c0_2 = arith.constant 0 : index
    %c0_3 = arith.constant 0 : index
    %4 = vector.load %arg3[%c0_2, %c0_3] : memref<128x128xf32, #tpu.memory_space<vmem>>, vector<128x128xf32>
    %cst = arith.constant dense<0.000000e+00> : vector<16x128xf32>
    %5 = tpu.matmul %3, %4, %cst {dimension_numbers = #tpu.dot_dimension_numbers<[1], [0], [0], [1], [0, 0, 1, 1], [], []>} : vector<16x128xf32>, vector<128x128xf32>, vector<16x128xf32> -> vector<16x128xf32>
    %c0_4 = arith.constant 0 : index
    %c0_5 = arith.constant 0 : index
    %6 = vector.load %arg4[%c0_4, %c0_5] : memref<1x128xf32, #tpu.memory_space<vmem>>, vector<1x128xf32>
    %7 = vector.broadcast %6 : vector<1x128xf32> to vector<16x128xf32>
    %8 = arith.addf %5, %7 : vector<16x128xf32>
    %cst_6 = arith.constant 5.000000e-01 : f32
    %9 = vector.broadcast %cst_6 : f32 to vector<16x128xf32>
    %10 = arith.mulf %9, %8 : vector<16x128xf32>
    %cst_7 = arith.constant 4.471500e-02 : f32
    %11 = vector.broadcast %cst_7 : f32 to vector<16x128xf32>
    %12 = arith.mulf %11, %8 : vector<16x128xf32>
    %13 = arith.mulf %12, %8 : vector<16x128xf32>
    %14 = arith.mulf %13, %8 : vector<16x128xf32>
    %15 = arith.addf %8, %14 : vector<16x128xf32>
    %cst_8 = arith.constant 0.797884583 : f32
    %16 = vector.broadcast %cst_8 : f32 to vector<16x128xf32>
    %17 = arith.mulf %16, %15 : vector<16x128xf32>
    %18 = math.tanh %17 : vector<16x128xf32>
    %cst_9 = arith.constant 1.000000e+00 : f32
    %19 = vector.broadcast %cst_9 : f32 to vector<16x128xf32>
    %20 = arith.addf %19, %18 : vector<16x128xf32>
    %21 = arith.mulf %10, %20 : vector<16x128xf32>
    %c0_10 = arith.constant 0 : index
    %c0_11 = arith.constant 0 : index
    %22 = vector.load %arg8[%c0_10, %c0_11] : memref<16x128xf32, #tpu.memory_space<vmem>>, vector<16x128xf32>
    %c0_12 = arith.constant 0 : index
    %c0_13 = arith.constant 0 : index
    %23 = vector.load %arg5[%c0_12, %c0_13] : memref<128x128xf32, #tpu.memory_space<vmem>>, vector<128x128xf32>
    %cst_14 = arith.constant dense<0.000000e+00> : vector<16x128xf32>
    %24 = tpu.matmul %21, %23, %cst_14 {dimension_numbers = #tpu.dot_dimension_numbers<[1], [0], [0], [1], [0, 0, 1, 1], [], []>} : vector<16x128xf32>, vector<128x128xf32>, vector<16x128xf32> -> vector<16x128xf32>
    %25 = arith.addf %22, %24 : vector<16x128xf32>
    %c0_15 = arith.constant 0 : index
    %c0_16 = arith.constant 0 : index
    %26 = vector.load %arg8[%c0_15, %c0_16] : memref<16x128xf32, #tpu.memory_space<vmem>>, vector<16x128xf32>
    tpu.vector_store %arg8[%c0_15, %c0_16], %25 {strides = array<i32>} : memref<16x128xf32, #tpu.memory_space<vmem>>, vector<16x128xf32>,
    %c1_i32 = arith.constant 1 : i32
    %27 = arith.cmpi eq, %arg1, %c1_i32 : i32
    %28 = arith.extui %27 : i1 to i32
    %c0_i32_17 = arith.constant 0 : i32
    %29 = arith.cmpi ne, %28, %c0_i32_17 : i32
    scf.if %29 {
      %c0_18 = arith.constant 0 : index
      %c0_19 = arith.constant 0 : index
      %30 = vector.load %arg8[%c0_18, %c0_19] : memref<16x128xf32, #tpu.memory_space<vmem>>, vector<16x128xf32>
      %c0_20 = arith.constant 0 : index
      %c0_21 = arith.constant 0 : index
      %31 = vector.load %arg6[%c0_20, %c0_21] : memref<1x128xf32, #tpu.memory_space<vmem>>, vector<1x128xf32>
      %32 = vector.broadcast %31 : vector<1x128xf32> to vector<16x128xf32>
      %33 = arith.addf %30, %32 : vector<16x128xf32>
      %c0_22 = arith.constant 0 : index
      %c0_23 = arith.constant 0 : index
      %34 = vector.load %arg7[%c0_22, %c0_23] : memref<16x128xf32, #tpu.memory_space<vmem>>, vector<16x128xf32>
      tpu.vector_store %arg7[%c0_22, %c0_23], %33 {strides = array<i32>} : memref<16x128xf32, #tpu.memory_space<vmem>>, vector<16x128xf32>,
    } else {
    }
    return
  }
  func.func @transform_0(%arg0: i32, %arg1: i32) -> (i32, i32) {
    %c0_i32 = arith.constant 0 : i32
    %c0_i32_0 = arith.constant 0 : i32
    return %arg0, %c0_i32 : i32, i32
  }
  func.func @transform_1(%arg0: i32, %arg1: i32) -> (i32, i32) {
    %c0_i32 = arith.constant 0 : i32
    %c0_i32_0 = arith.constant 0 : i32
    return %c0_i32, %arg1 : i32, i32
  }
  func.func @transform_2(%arg0: i32, %arg1: i32) -> (i32, i32) {
    %c0_i32 = arith.constant 0 : i32
    %c0_i32_0 = arith.constant 0 : i32
    return %c0_i32, %arg1 : i32, i32
  }
  func.func @transform_3(%arg0: i32, %arg1: i32) -> (i32, i32) {
    %c0_i32 = arith.constant 0 : i32
    %c0_i32_0 = arith.constant 0 : i32
    return %arg1, %c0_i32 : i32, i32
  }
  func.func @transform_4(%arg0: i32, %arg1: i32) -> (i32, i32) {
    %c0_i32 = arith.constant 0 : i32
    %c0_i32_0 = arith.constant 0 : i32
    %c0_i32_1 = arith.constant 0 : i32
    return %c0_i32, %c0_i32_0 : i32, i32
  }
  func.func @transform_5(%arg0: i32, %arg1: i32) -> (i32, i32) {
    %c0_i32 = arith.constant 0 : i32
    %c0_i32_0 = arith.constant 0 : i32
    return %arg0, %c0_i32 : i32, i32
  }
}

</mosaic_0001>

<bundles_post_ra>
// kernel: tpu_custom_call.1
= control target key start
LH: loop header
LB: loop body
LE: loop exit
PB: predicated region body
PF: predicated region fallthrough
CT: control target
= control target key end

     0   :  { %10 = vsyncpa [#allocation4], 0  ;;  %s1327_s0 = inlined_call_operand.hbm [shape: f32[16,128], index: 0, kind: input, shape index: {}]   ;;  %s1328_s1 = inlined_call_operand.hbm [shape: f32[128,256], index: 1, kind: input, shape index: {}]   ;;  %s1329_s2 = inlined_call_operand.vmem [shape: f32[1,256], index: 2, kind: input, shape index: {}]   ;;  %s1330_s3 = inlined_call_operand.hbm [shape: f32[256,128], index: 3, kind: input, shape index: {}]   ;;  %s1331_s4 = inlined_call_operand.vmem [shape: f32[1,128], index: 4, kind: input, shape index: {}]   ;;  %s1332_s5 = inlined_call_operand.hbm [shape: f32[16,128], index: 5, kind: output, shape index: {}]  }
   0x1   :  { %11 = vsyncpa [#allocation7], 0 }
   0x2   :  { %13 = vsyncpa [#allocation7 + $0x1], 0 }
   0x3   :  { %14 = vsyncpa [#allocation5], 0  ;;  %s1100_s18 = smov 0   ;;  %s1102_s19 = smov 0  }
   0x4   :  { %s1104_s20 = smov 0   ;;  %s1106_s21 = smov 0  }
   0x5   :  { %s1108_s22 = smov 0   ;;  %s1110_s23 = smov 0  }
   0x6 LB: > { %s29_s24 = sadd.s32 1, %s1054_s22  ;;  %s65_s25 = sadd.s32 1, %s1046_s20  ;;  %s1058_s23 = sphi %s1110_s23, %s20_s23   ;;  %s1054_s22 = sphi %s1108_s22, %s1348_s22   ;;  %s1050_s21 = sphi %s1106_s21, %s1347_s21   ;;  %s1046_s20 = sphi %s1104_s20, %s1346_s20   ;;  %s1042_s19 = sphi %s1102_s19, %s1345_s19   ;;  %s1038_s18 = sphi %s1100_s18, %s1344_s18  }
   0x7   : > { %p30_p0 = scmp.ge.s32.totalorder %s29_s24, 2  ;;  %p72_p1 = scmp.ne.s32.totalorder %s1046_s20, %s1042_s19 }
   0x8   : > { %p73_p2 = scmp.eq.s32.totalorder %s1058_s23, 0  ;;  %p830_p5 = scmp.lt.s32.totalorder %s1058_s23, 2 }
   0x9   : > { %s1350_s24 = smov (%p30_p0, %s29_s24), 0  ;;  %s220_s28 = sand.u32 1, %s1058_s23  }
   0xa   : > { %p1137_p3 = por %p73_p2, %p72_p1  ;;  %s62_s27 = ssub.s32 %s1054_s22, %s1350_s24 }
   0xb   : > { %p63_p4 = scmp.eq.s32.totalorder %s62_s27, 0  ;;  %s222_s29 = sand.u32 1, %s1046_s20  }
   0xc   : > { %s1149_s6 = sshll.u32 %s222_s29, 7  ;;  %s683_s7 = sshll.u32 %s1054_s22, 7 }
   0xd   : > { %s1147_s30 = scalar_select %p63_p4, %s1046_s20, %s65_s25  }
   0xe   : > { %s229_s10 = scalar_lea.hbm %s1328_s1, %s683_s7  ;;  %s224_s11 = scalar_lea.vmem [#allocation6], %s1149_s6 }
   0xf   : > { %s230_s12 = sshll.u32 %s224_s11, 4  ;;  %p1158_p6 = pnand %p830_p5, %p1137_p3  ;;  %s231_s12 = int_to_ptr.vmem [resolvable:$true] %s230_s12 }
  0x10   : > { %s1162_s14 = scalar_lea.sflag [#allocation7], %s220_s28  ;;  %s907_s15 = scalar_lea.vmem %s231_s12, 2048 }
  0x11   : > { %p896_p7 = pneg %p1158_p6  ;;  %p908_p8 = scmp.ne.s32.totalorder %s231_s12, %s907_s15 }
  0x12   : > { %s1060_s16 = smov [#allocation6]  }
  0x13   : > { %p910_p9 = pnand %p908_p8, %p896_p7  ;;  %s912_s17 = sshll.u32 %s1060_s16, 4  ;;  %s913_s17 = int_to_ptr.vmem [resolvable:$false] %s912_s17 }
  0x14   : > { %s914_s25 = scalar_lea.vmem %s913_s17, 4096  ;;  %p915_p11 = scmp.lt.s32.totalorder %s231_s12, %s913_s17 }
  0x15   : > { %p911_p10 = pneg %p910_p9  ;;  %p916_p12 = scmp.lt.s32.totalorder %s914_s25, %s907_s15 }
  0x17   : > { %p917_p13 = por %p916_p12, %p915_p11 }
  0x19   : > { %p918_p0 = pnand %p917_p13, %p911_p10 }
  0x1b   : > { %921 = shalt.err (!%p918_p0)
}
  0x1c   : > { %s1061_s26 = smov 256   ;;  %s1333_s27 = smov 128  }
  0x1d   : > { %s1335_s28 = smov 8   ;;  %s1175_s29 = sadd.s32 4294967295, %s1058_s23  }
  0x1e   : > { %825 = dma.hbm_to_vmem [thread:$0]  (!%p1158_p6), %s229_s10, 2048, %s231_s12, %s1162_s14, %s1061_s26, %s1333_s27, %s1335_s28  }
  0x1f   : > { %p78_p1 = scmp.ne.s32.totalorder %s1042_s19, %s1038_s18  ;;  %p79_p2 = scmp.eq.s32.totalorder %s1175_s29, 0 }
  0x20   : > { %p679_p3 = scmp.ge.s32.totalorder %s1058_s23, 1  ;;  %p188_p4 = scmp.lt.s32.totalorder %s1058_s23, 3 }
  0x21   : > { %p1184_p5 = por %p79_p2, %p78_p1  ;;  %s1064_s9 = smov [#allocation3]  }
  0x22   : > { %p1188_p8 = pnand %p679_p3, %p188_p4  ;;  %s203_s10 = sshll.u32 %s1064_s9, 4  ;;  %s1192_s10 = int_to_ptr.vmem [resolvable:$true] %s203_s10 }
  0x23   : > { %s699_s18 = sshll.u32 %s1054_s22, 11  ;;  %s250_s16 = scalar_lea.vmem [#allocation8], %s1149_s6 }
  0x24   : > { %p818_p9 = pneg %p1188_p8  ;;  %s256_s15 = scalar_lea.hbm %s1330_s3, %s699_s18 }
  0x25   : > { %s257_s17 = sshll.u32 %s250_s16, 4  ;;  %s1065_s9 = smov [#allocation8]   ;;  %s258_s17 = int_to_ptr.vmem [resolvable:$true] %s257_s17 }
  0x26   : > { %p1203_p10 = pnand %p818_p9, %p79_p2  ;;  %s935_s26 = scalar_lea.vmem %s258_s17, 2048 }
  0x27   : > { %p936_p11 = scmp.ne.s32.totalorder %s258_s17, %s935_s26  ;;  %s940_s27 = sshll.u32 %s1065_s9, 4  ;;  %s941_s27 = int_to_ptr.vmem [resolvable:$false] %s940_s27 }
  0x28   : > { %s942_s28 = scalar_lea.vmem %s941_s27, 4096  ;;  %p943_p0 = scmp.lt.s32.totalorder %s258_s17, %s941_s27 }
  0x29   : > { %p938_p12 = pnand %p936_p11, %p896_p7  ;;  %p944_p1 = scmp.lt.s32.totalorder %s942_s28, %s935_s26 }
  0x2b   : > { %p939_p13 = pneg %p938_p12  ;;  %p945_p3 = por %p944_p1, %p943_p0 }
  0x2d   : > { %p946_p4 = pnand %p945_p3, %p939_p13 }
  0x2f   : > { %949 = shalt.err (!%p946_p4)
}
  0x30   : > { %s1342_s6 = smov 8   ;;  %s1343_s18 = smov 128  }
  0x31   : > { %828 = dma.hbm_to_vmem [thread:$0]  (!%p1158_p6), %s256_s15, 2048, %s258_s17, %s1162_s14, %s1343_s18, %s1343_s18, %s1342_s6  }
  0x32   : > { %p952_p7 = pneg %p1203_p10  ;;  %s961_s11 = scalar_lea.vmem %s1192_s10, 256 }
  0x33   : > { %p962_p9 = scmp.ne.s32.totalorder %s1192_s10, %s961_s11  ;;  %p969_p13 = scmp.lt.s32.totalorder %s1192_s10, %s1192_s10 }
  0x34   : > { %p970_p0 = scmp.lt.s32.totalorder %s961_s11, %s961_s11 }
  0x35   : > { %p964_p11 = pnand %p962_p9, %p952_p7 }
  0x36   : > { %p971_p1 = por %p970_p0, %p969_p13 }
  0x37   : > { %p965_p12 = pneg %p964_p11 }
  0x39   : > { %p972_p3 = pnand %p971_p1, %p965_p12 }
  0x3b   : > { %975 = shalt.err (!%p972_p3)
}
  0x3c   : > { %821 = dma.hbm_to_vmem [thread:$0]  (!%p1203_p10), %s1327_s0, 256, %s1192_s10, [#allocation4], %s1343_s18, %s1343_s18, %s1342_s6  }
  0x3d   : > { %269 = sbr.rel (%p1188_p8) target bundleno = 564 (0x234), region = 40 }
  0x42   : > { %1025 = dma.done.wait (%p79_p2), [#allocation4], 256  }
  0x43   : > { %1027 = vsyncadd (%p79_p2), [#allocation4], 4294967040  ;;  %s275_s27 = sand.u32 1, %s1175_s29   ;;  %s277_s28 = sand.u32 1, %s1042_s19  }
  0x44   : > { %s689_s12 = sshll.u32 %s277_s28, 7  ;;  %s276_s15 = scalar_lea.sflag [#allocation7], %s275_s27 }
  0x45   : > { %s1239_s16 = scalar_lea.vmem [#allocation6], %s689_s12 }
  0x46   : > { %1029 = dma.done.wait (%p1184_p5), %s276_s15, 4096  }
  0x47   : > { %1031 = vsyncadd (%p1184_p5), %s276_s15, 4294963200  ;;  %p319_p6 = scmp.lt.s32.totalorder %s1050_s21, 1  ;;  %s1253_s26 = scalar_lea.vmem [#allocation8], %s689_s12 }
  0x48   : > { %p691_p2 = scmp.ne.s32.totalorder %s1050_s21, 0 }
  0x49   : > { %s1247_s8 = scalar_select %p319_p6, %s1050_s21, 1 }
  0x4a   : > { %327 = sbr.rel (%p691_p2) target bundleno = 81 (0x51), region = 56 }
  0x4b   : > { %s321_s25 = scalar_lea.vmem %s1329_s2, %s1247_s8 }
  0x4f   : > { %v1066_v0 = vmov 0.0  }
  0x50   : > { %328 = vst [vmem:[#allocation2] sm:$0xff] %v1066_v0  ;;  %329 = vst [vmem:[#allocation2 + $0x8] sm:$0xff] %v1066_v0 }
  0x51 PF: > { %v347_v1 = vld [vmem:[%s1239_s16 + $0x78] sm:$0xff]  ;;  %v346_v2 = vld [vmem:[%s1239_s16 + $0x70] sm:$0xff]  ;;  %v345_v3 = vld [vmem:[%s1239_s16 + $0x68] sm:$0xff]  ;;  %p693_p5 = scmp.ne.s32.totalorder %s1050_s21, 1 }
  0x52   : > { %736 = vmatprep.subr.mxu0 %v347_v1  ;;  %v344_v4 = vld [vmem:[%s1239_s16 + $0x60] sm:$0xff]  ;;  %v330_v5 = vld [vmem:[#allocation3] sm:$0xff]  ;;  %v343_v6 = vld [vmem:[%s1239_s16 + $0x58] sm:$0xff] }
  0x53   : > { %737 = vmatpush3.msra.mxu0 %v347_v1  ;;  %768 = vmatprep.mubr.f32.mxu0 %v330_v5  ;;  %v342_v7 = vld [vmem:[%s1239_s16 + $0x50] sm:$0xff]  ;;  %v341_v8 = vld [vmem:[%s1239_s16 + $0x48] sm:$0xff]  ;;  %v340_v9 = vld [vmem:[%s1239_s16 + $0x40] sm:$0xff] }
  0x54   : > { %738 = vmatprep.subr.mxu0 %v346_v2  ;;  %v339_v10 = vld [vmem:[%s1239_s16 + $0x38] sm:$0xff]  ;;  %v338_v11 = vld [vmem:[%s1239_s16 + $0x30] sm:$0xff]  ;;  %v337_v12 = vld [vmem:[%s1239_s16 + $0x28] sm:$0xff] }
  0x55   : > { %739 = vmatpush3.msra.mxu0 %v346_v2  ;;  %v336_v13 = vld [vmem:[%s1239_s16 + $0x20] sm:$0xff]  ;;  %v335_v14 = vld [vmem:[%s1239_s16 + $0x18] sm:$0xff]  ;;  %v334_v15 = vld [vmem:[%s1239_s16 + $0x10] sm:$0xff] }
  0x56   : > { %740 = vmatprep.subr.mxu0 %v345_v3  ;;  %v333_v16 = vld [vmem:[%s1239_s16 + $0x8] sm:$0xff]  ;;  %v332_v17 = vld [vmem:[%s1239_s16] sm:$0xff]  ;;  %v331_v18 = vld [vmem:[#allocation3 + $0x8] sm:$0xff] }
  0x57   : > { %741 = vmatpush3.msra.mxu0 %v345_v3  ;;  %v465_v19 = vld [vmem:[%s1253_s26 + $0x78] sm:$0xff]  ;;  %v464_v20 = vld [vmem:[%s1253_s26 + $0x70] sm:$0xff]  ;;  %v463_v21 = vld [vmem:[%s1253_s26 + $0x68] sm:$0xff] }
  0x58   : > { %742 = vmatprep.subr.mxu0 %v344_v4  ;;  %771 = vmatprep.subr.mxu1 %v465_v19  ;;  %v462_v22 = vld [vmem:[%s1253_s26 + $0x60] sm:$0xff]  ;;  %v461_v23 = vld [vmem:[%s1253_s26 + $0x58] sm:$0xff]  ;;  %v460_v24 = vld [vmem:[%s1253_s26 + $0x50] sm:$0xff] }
  0x59   : > { %743 = vmatpush3.msra.mxu0 %v344_v4  ;;  %772 = vmatpush3.msra.mxu1 %v465_v19  ;;  %v459_v25 = vld [vmem:[%s1253_s26 + $0x48] sm:$0xff]  ;;  %v458_v26 = vld [vmem:[%s1253_s26 + $0x40] sm:$0xff]  ;;  %v457_v27 = vld [vmem:[%s1253_s26 + $0x38] sm:$0xff] }
  0x5a   : > { %744 = vmatprep.subr.mxu0 %v343_v6  ;;  %773 = vmatprep.subr.mxu1 %v464_v20  ;;  %v456_v28 = vld [vmem:[%s1253_s26 + $0x30] sm:$0xff]  ;;  %v455_v29 = vld [vmem:[%s1253_s26 + $0x28] sm:$0xff]  ;;  %v454_v30 = vld [vmem:[%s1253_s26 + $0x20] sm:$0xff] }
  0x5b   : > { %745 = vmatpush3.msra.mxu0 %v343_v6  ;;  %774 = vmatpush3.msra.mxu1 %v464_v20  ;;  %v453_v31 = vld [vmem:[%s1253_s26 + $0x18] sm:$0xff]  ;;  %v452_v32 = vld [vmem:[%s1253_s26 + $0x10] sm:$0xff]  ;;  %v451_v33 = vld [vmem:[%s1253_s26 + $0x8] sm:$0xff] }
  0x5c   : > { %746 = vmatprep.subr.mxu0 %v342_v7  ;;  %775 = vmatprep.subr.mxu1 %v463_v21  ;;  %v450_v34 = vld [vmem:[%s1253_s26] sm:$0xff]  ;;  %v449_v58 = vld [vmem:[#allocation2 + $0x8] sm:$0xff] }
  0x5d   : > { %747 = vmatpush3.msra.mxu0 %v342_v7  ;;  %776 = vmatpush3.msra.mxu1 %v463_v21  ;;  %v692_v35 = vld [vmem:[%s321_s25] ss:$0 sm:$0xff] }
  0x5e   : > { %748 = vmatprep.subr.mxu0 %v341_v8  ;;  %777 = vmatprep.subr.mxu1 %v462_v22  ;;  %v448_v60 = vld [vmem:[#allocation2] sm:$0xff] }
  0x5f   : > { %749 = vmatpush3.msra.mxu0 %v341_v8  ;;  %778 = vmatpush3.msra.mxu1 %v462_v22 }
  0x60   : > { %750 = vmatprep.subr.mxu0 %v340_v9  ;;  %779 = vmatprep.subr.mxu1 %v461_v23 }
  0x61   : > { %751 = vmatpush3.msra.mxu0 %v340_v9  ;;  %780 = vmatpush3.msra.mxu1 %v461_v23 }
  0x62   : > { %752 = vmatprep.subr.mxu0 %v339_v10  ;;  %781 = vmatprep.subr.mxu1 %v460_v24 }
  0x63   : > { %753 = vmatpush3.msra.mxu0 %v339_v10  ;;  %782 = vmatpush3.msra.mxu1 %v460_v24 }
  0x64   : > { %754 = vmatprep.subr.mxu0 %v338_v11  ;;  %783 = vmatprep.subr.mxu1 %v459_v25 }
  0x65   : > { %755 = vmatpush3.msra.mxu0 %v338_v11  ;;  %784 = vmatpush3.msra.mxu1 %v459_v25 }
  0x66   : > { %756 = vmatprep.subr.mxu0 %v337_v12  ;;  %785 = vmatprep.subr.mxu1 %v458_v26 }
  0x67   : > { %757 = vmatpush3.msra.mxu0 %v337_v12  ;;  %786 = vmatpush3.msra.mxu1 %v458_v26 }
  0x68   : > { %758 = vmatprep.subr.mxu0 %v336_v13  ;;  %787 = vmatprep.subr.mxu1 %v457_v27 }
  0x69   : > { %759 = vmatpush3.msra.mxu0 %v336_v13  ;;  %788 = vmatpush3.msra.mxu1 %v457_v27 }
  0x6a   : > { %760 = vmatprep.subr.mxu0 %v335_v14  ;;  %789 = vmatprep.subr.mxu1 %v456_v28 }
  0x6b   : > { %761 = vmatpush3.msra.mxu0 %v335_v14  ;;  %790 = vmatpush3.msra.mxu1 %v456_v28 }
  0x6c   : > { %762 = vmatprep.subr.mxu0 %v334_v15  ;;  %791 = vmatprep.subr.mxu1 %v455_v29 }
  0x6d   : > { %763 = vmatpush3.msra.mxu0 %v334_v15  ;;  %792 = vmatpush3.msra.mxu1 %v455_v29 }
  0x6e   : > { %764 = vmatprep.subr.mxu0 %v333_v16  ;;  %793 = vmatprep.subr.mxu1 %v454_v30 }
  0x6f   : > { %765 = vmatpush3.msra.mxu0 %v333_v16  ;;  %794 = vmatpush3.msra.mxu1 %v454_v30 }
  0x70   : > { %766 = vmatprep.subr.mxu0 %v332_v17  ;;  %795 = vmatprep.subr.mxu1 %v453_v31 }
  0x71   : > { %767 = vmatpush3.msra.mxu0 %v332_v17  ;;  %796 = vmatpush3.msra.mxu1 %v453_v31 }
  0x72   : > { %769 = vmatmul.mubr.f32.vlgmr.msra.gmra.mxu0 %v331_v18  ;;  %797 = vmatprep.subr.mxu1 %v452_v32 }
  0x73   : > { %798 = vmatpush3.msra.mxu1 %v452_v32 }
  0x74   : > { %799 = vmatprep.subr.mxu1 %v451_v33 }
  0x75   : > { %800 = vmatpush3.msra.mxu1 %v451_v33 }
  0x76   : > { %801 = vmatprep.subr.mxu1 %v450_v34 }
  0x77   : > { %802 = vmatpush3.msra.mxu1 %v450_v34 }
 0x132   : > { %v770_v36 = vpop.f32.mrf.mxu0 }
 0x133   : > { %v427_v37 = vadd.f32 %v770_v36, %v692_v35 }
 0x134   : > { %v421_v38 = vpop.f32.mrf.mxu0 }
 0x135   : > { %v433_v39 = vmul.f32 0.044715, %v427_v37  ;;  %v422_v40 = vadd.f32 %v692_v35, %v421_v38  ;;  %v431_v55 = vmul.f32 0.5, %v427_v37 }
 0x137   : > { %v435_v41 = vmul.f32 %v433_v39, %v427_v37  ;;  %v432_v42 = vmul.f32 0.044715, %v422_v40  ;;  %v430_v53 = vmul.f32 0.5, %v422_v40 }
 0x139   : > { %v434_v43 = vmul.f32 %v432_v42, %v422_v40  ;;  %v437_v44 = vmul.f32 %v435_v41, %v427_v37 }
 0x13b   : > { %v436_v45 = vmul.f32 %v434_v43, %v422_v40  ;;  %v439_v46 = vadd.f32 %v437_v44, %v427_v37 }
 0x13d   : > { %v438_v47 = vadd.f32 %v436_v45, %v422_v40  ;;  %v441_v48 = vmul.f32 0.7978846, %v439_v46 }
 0x13f   : > { %v440_v49 = vmul.f32 0.7978846, %v438_v47  ;;  %890 = vtanh.f32 %v441_v48 }
 0x141   : > { %892 = vtanh.f32 %v440_v49 }
 0x14c   : > { %v891_v50 = vpop.eup %890 }
 0x14d   : > { %v445_v52 = vadd.f32 1.0, %v891_v50 }
 0x14e   : > { %v893_v51 = vpop.eup %892 }
 0x14f   : > { %v444_v54 = vadd.f32 1.0, %v893_v51  ;;  %v447_v57 = vmul.f32 %v445_v52, %v431_v55 }
 0x151   : > { %v446_v56 = vmul.f32 %v444_v54, %v430_v53 }
 0x153   : > { %803 = vmatprep.mubr.f32.mxu1 %v446_v56 }
 0x154   : > { %804 = vmatmul.mubr.f32.vlgmr.msra.gmra.mxu1 %v447_v57 }
 0x214   : > { %v805_v59 = vpop.f32.mrf.mxu1 }
 0x215   : > { %v542_v61 = vadd.f32 %v805_v59, %v449_v58  ;;  %548 = sbr.rel (%p693_p5) target bundleno = 548 (0x224), region = 60 }
 0x216   : > { %v532_v62 = vpop.f32.mrf.mxu1 }
 0x217   : > { %544 = vst [vmem:[#allocation2 + $0x8] sm:$0xff] %v542_v61  ;;  %v541_v63 = vadd.f32 %v532_v62, %v448_v60 }
 0x219   : > { %543 = vst [vmem:[#allocation2] sm:$0xff] %v541_v63 }
 0x21a   : > { %v694_v1 = vld [vmem:[%s1331_s4] ss:$0 sm:$0xff] }
 0x21e   : > { %v550_v2 = vld [vmem:[#allocation2 + $0x8] sm:$0xff] }
 0x21f   : > { %v559_v4 = vadd.f32 %v694_v1, %v550_v2 }
 0x220   : > { %v549_v0 = vld [vmem:[#allocation2] sm:$0xff] }
 0x221   : > { %v558_v3 = vadd.f32 %v694_v1, %v549_v0  ;;  %561 = vst [vmem:[#allocation9 + $0x8] sm:$0xff] %v559_v4 }
 0x223   : > { %560 = vst [vmem:[#allocation9] sm:$0xff] %v558_v3 }
 0x224 PF: > { %p832_p8 = scmp.eq.s32.totalorder %s1175_s29, 1  ;;  %s1067_s11 = smov [#allocation9]  }
 0x225   : > { %s571_s13 = sshll.u32 %s1067_s11, 4  ;;  %s572_s13 = int_to_ptr.vmem [resolvable:$true] %s571_s13 }
 0x226   : > { %s976_s14 = scalar_lea.vmem %s572_s13, 256  ;;  %p983_p9 = scmp.lt.s32.totalorder %s572_s13, %s572_s13 }
 0x227   : > { %p977_p10 = scmp.ne.s32.totalorder %s572_s13, %s976_s14  ;;  %p984_p11 = scmp.lt.s32.totalorder %s976_s14, %s976_s14 }
 0x229   : > { %p978_p4 = pnand %p977_p10, %p832_p8  ;;  %p985_p12 = por %p984_p11, %p983_p9 }
 0x22b   : > { %p979_p7 = pneg %p978_p4 }
 0x22d   : > { %p986_p13 = pnand %p985_p12, %p979_p7 }
 0x22f   : > { %989 = shalt.err (!%p986_p13)
}
 0x230   : > { %s1068_s21 = smov 128   ;;  %s1069_s27 = smov 8  }
 0x231   : > { %815 = dma.vmem_to_hbm [thread:$0]  (%p832_p8), %s572_s13, 256, %s1332_s5, [#allocation5], %s1068_s21, %s1068_s21, %s1069_s27  }
 0x232   : > { %1033 = dma.done.wait (%p832_p8), [#allocation5], 256  }
 0x233   : > { %1035 = vsyncadd (%p832_p8), [#allocation5], 4294967040 }
 0x234 PF: > { %s20_s23 = sadd.s32 1, %s1058_s23   ;;  %s1344_s18 = smov %s1042_s19 }
 0x235   : > { %p17_p0 = scmp.ge.s32.totalorder %s20_s23, 4   ;;  %s1345_s19 = smov %s1046_s20 }
 0x236   : > { %s1346_s20 = smov %s1147_s30  ;;  %s1347_s21 = smov %s1054_s22 }
 0x237   : > { %s1348_s22 = smov %s1350_s24  ;;  %19 = sbr.rel (!%p17_p0) target bundleno = 6 (0x6), region = 106 }
 0x23c   :  { %587 = vsyncpa [#allocation4], 1 }
 0x23d   :  { %589 = vsyncpa [#allocation4 + $0x1], 1 }
 0x23e   :  { %590 = vsyncpa [#allocation7], 1 }
 0x23f   :  { %592 = vsyncpa [#allocation7 + $0x1], 1 }
 0x240   :  { %593 = vsyncpa [#allocation5], 1 }
 0x241   :  { %595 = vsyncpa [#allocation5 + $0x1], 1 }

</bundles_post_ra>
